<compile_context>
chip_gen: v7x
topology: tpu7x:2x2x1
jax: 0.10.0
libtpu: 0.0.40
codegen_flags: <defaults>
</compile_context>

<pallas_src>
import math
import jax
import jax.numpy as jnp
from jax.experimental import pallas as pl
from jax.experimental.pallas import tpu as pltpu

_LANE = 128


def _round_up(v, m):
    return ((v + m - 1) // m) * m


def _cdiv(a, b):
    return -(-a // b)


def _choose_batch_tiling(B, block_m):
    """Pick (tm, num_m): tm a multiple of 16; whole batch in one step when it
    fits; otherwise bias the grid size to an even count for v7x's two TCs."""
    block_m = max(16, _round_up(block_m, 16))
    b16 = _round_up(B, 16)
    if b16 <= block_m:
        return b16, 1                       # single grid step
    num_m = _cdiv(b16, block_m)
    if num_m > 1 and num_m % 2:
        num_m += 1                          # even split across 2 TensorCores
    tm = _round_up(_cdiv(b16, num_m), 16)
    num_m = _cdiv(B, tm)                    # actual grid; never a fully-OOB tile
    return tm, num_m


def _make_actor_kernel(K, k_rows, compute_dtype):
    """K: true input width, k_rows: padded W1 row count inside the w12 slab."""

    def kernel(x_ref, w12_ref, w3_ref, b12_ref, b3_ref, o_ref):
        # x arrives in f32 straight from HBM; cast to bf16 on the VPU (free
        # slot) instead of a separate wrapper-side pad/cast pass over HBM.
        x = x_ref[...].astype(compute_dtype)                   # (tm, K)

        # Layer 1: bf16 MXU matmul, f32 accumulate, f32 bias + ReLU.
        h = jnp.dot(x, w12_ref[:K, :], preferred_element_type=jnp.float32)
        h = jnp.maximum(h + b12_ref[0:1, :], 0.0).astype(compute_dtype)

        # Layer 2 (weight slice taken right before use to keep live range short).
        h = jnp.dot(h, w12_ref[k_rows:, :], preferred_element_type=jnp.float32)
        h = jnp.maximum(h + b12_ref[1:2, :], 0.0).astype(compute_dtype)

        # Layer 3 + tanh (f32 EUP), lane-dense store.
        h = jnp.dot(h, w3_ref[...], preferred_element_type=jnp.float32)
        h = h + b3_ref[...]
        o_ref[...] = jnp.tanh(h).astype(o_ref.dtype)

    return kernel


def _pack_params(w1, b1, w2, b2, w3, b3, k_rows, h_pad, n_out, compute_dtype):
    def pad2(a, rows, cols):
        return jnp.pad(a, ((0, rows - a.shape[0]), (0, cols - a.shape[1])))

    # W1 (rows padded to k_rows so the W2 slice stays 16-row aligned for bf16)
    # stacked on top of W2 -> one VMEM-resident slab.
    w12 = jnp.concatenate(
        [pad2(w1, k_rows, h_pad), pad2(w2, h_pad, h_pad)], axis=0
    ).astype(compute_dtype)
    # W3 kept separate so its column width (n_out) is decoupled from h_pad.
    w3p = pad2(w3, h_pad, n_out).astype(compute_dtype)
    # Biases stay f32 (added to the f32 accumulator).
    b12 = jnp.concatenate(
        [pad2(b1.reshape(1, -1), 1, h_pad),
         pad2(b2.reshape(1, -1), 1, h_pad)], axis=0
    ).astype(jnp.float32)
    b3p = pad2(b3.reshape(1, -1), 1, n_out).astype(jnp.float32)
    return w12, w3p, b12, b3p


def actor_forward(x, w1, b1, w2, b2, w3, b3, *,
                  block_m=1024, compute_dtype=jnp.bfloat16):
    """x: (B, input_size). Weights: (in, out). Biases: (1, out)."""
    B, K = x.shape
    H = w1.shape[1]
    O = w3.shape[1]

    k_rows = _round_up(K, 16)          # W1 row-pad: keeps W2 slice sublane-aligned
    h_pad = _round_up(H, _LANE)        # hidden width (lane-dense)
    n_out = _round_up(O, _LANE)        # output width, decoupled from hidden

    tm, num_m = _choose_batch_tiling(B, block_m)

    w12, w3p, b12, b3p = _pack_params(w1, b1, w2, b2, w3, b3,
                                      k_rows, h_pad, n_out, compute_dtype)

    out = pl.pallas_call(
        _make_actor_kernel(K, k_rows, compute_dtype),
        out_shape=jax.ShapeDtypeStruct((B, n_out), jnp.float32),
        grid_spec=pltpu.PrefetchScalarGridSpec(
            num_scalar_prefetch=0,
            grid=(num_m,),
            in_specs=[
                # activations: batch-tiled, full-K block, pipelined by Pallas
                pl.BlockSpec((tm, K), lambda i: (i, 0)),
                # packed W1/W2 slab: constant index_map -> VMEM-resident
                pl.BlockSpec((k_rows + h_pad, h_pad), lambda i: (0, 0)),
                # W3: constant index_map -> VMEM-resident
                pl.BlockSpec((h_pad, n_out), lambda i: (0, 0)),
                # biases b1,b2 and b3 (f32, VMEM-resident)
                pl.BlockSpec((2, h_pad), lambda i: (0, 0)),
                pl.BlockSpec((1, n_out), lambda i: (0, 0)),
            ],
            out_specs=pl.BlockSpec((tm, n_out), lambda i: (i, 0)),
        ),
        compiler_params=pltpu.CompilerParams(
            dimension_semantics=("parallel",),      # megacore-shard batch axis
            vmem_limit_bytes=32 * 1024 * 1024,      # fits v7x's 64 MiB VMEM
        ),
    )(x, w12, w3p, b12, b3p)

    # Only a column trim remains (no row slice: out_shape batch dim == B);
    # skipped entirely when the true output width is already lane-dense.
    return out if O == n_out else out[:, :O]


def init_linear_params(key, in_features, out_features):
    """Deterministic PyTorch-style nn.Linear init: U(-1/sqrt(in), 1/sqrt(in))."""
    kw, kb = jax.random.split(key)
    bound = 1.0 / math.sqrt(in_features)
    # stored as (in, out) == transpose of PyTorch's (out, in)
    w = jax.random.uniform(kw, (in_features, out_features), jnp.float32,
                           minval=-bound, maxval=bound)
    b = jax.random.uniform(kb, (1, out_features), jnp.float32,
                           minval=-bound, maxval=bound)
    return w, b


def _ref_forward(x, w1, b1, w2, b2, w3, b3, compute_dtype):
    """Pure-JAX reference with the same precision policy as the kernel."""
    cd = compute_dtype
    h = jnp.dot(x.astype(cd), w1.astype(cd),
                preferred_element_type=jnp.float32) + b1
    h = jnp.maximum(h, 0.0)
    h = jnp.dot(h.astype(cd), w2.astype(cd),
                preferred_element_type=jnp.float32) + b2
    h = jnp.maximum(h, 0.0)
    h = jnp.dot(h.astype(cd), w3.astype(cd),
                preferred_element_type=jnp.float32) + b3
    return jnp.tanh(h)


if __name__ == "__main__":
    # Small shapes consistent with the module's state -> action MLP.
    batch = 300            # not a multiple of 16: exercises the partial tile
    input_size = 16
    hidden_size = 32
    output_size = 8

    key = jax.random.PRNGKey(0)
    k_x, k1, k2, k3 = jax.random.split(key, 4)

    x = jax.random.normal(k_x, (batch, input_size), jnp.float32)
    w1, b1 = init_linear_params(k1, input_size, hidden_size)
    w2, b2 = init_linear_params(k2, hidden_size, hidden_size)
    w3, b3 = init_linear_params(k3, hidden_size, output_size)

    # Whole batch runs as a single grid step (tm = 304).
    out = actor_forward(x, w1, b1, w2, b2, w3, b3)
    out = jax.block_until_ready(out)
    assert out.shape == (batch, output_size)

    # Precision-matched reference (bf16 matmul inputs, f32 accumulate/elementwise).
    ref_bf16 = _ref_forward(x, w1, b1, w2, b2, w3, b3, jnp.bfloat16)
    assert jnp.allclose(out, ref_bf16, atol=2e-3, rtol=2e-3), (
        float(jnp.max(jnp.abs(out - ref_bf16))))

    # Full-f32 semantic sanity check (looser tolerance covers bf16 rounding).
    ref_f32 = _ref_forward(x, w1, b1, w2, b2, w3, b3, jnp.float32)
    assert jnp.allclose(out, ref_f32, atol=3e-2, rtol=3e-2), (
        float(jnp.max(jnp.abs(out - ref_f32))))

    # Also exercise the multi-tile (even-grid) path for coverage.
    out_tiled = actor_forward(x, w1, b1, w2, b2, w3, b3, block_m=128)
    out_tiled = jax.block_until_ready(out_tiled)
    assert jnp.allclose(out_tiled, out, atol=1e-5, rtol=1e-5)

    print("KERNEL_OK")
</pallas_src>

<mosaic_0001>
module attributes {stable_mosaic.version = 11 : i64} {
  func.func @kernel(%arg0: i32, %arg1: memref<304x16xf32, #tpu.memory_space<vmem>>, %arg2: memref<144x128xbf16, #tpu.memory_space<vmem>>, %arg3: memref<128x128xbf16, #tpu.memory_space<vmem>>, %arg4: memref<2x128xf32, #tpu.memory_space<vmem>>, %arg5: memref<1x128xf32, #tpu.memory_space<vmem>>, %arg6: memref<304x128xf32, #tpu.memory_space<vmem>>) attributes {dimension_semantics = [#tpu.dimension_semantics<parallel>], iteration_bounds = array<i64: 1>, scalar_prefetch = 0 : i64, scratch_operands = 0 : i64, tpu.core_type = #tpu.core_type<tc>, window_params = [{transform_indices = @transform_0, window_bounds = array<i64: 304, 16>}, {pipeline_mode = #tpu.pipeline_mode<synchronous>, transform_indices = @transform_1, window_bounds = array<i64: 144, 128>}, {pipeline_mode = #tpu.pipeline_mode<synchronous>, transform_indices = @transform_2, window_bounds = array<i64: 128, 128>}, {pipeline_mode = #tpu.pipeline_mode<synchronous>, transform_indices = @transform_3, window_bounds = array<i64: 2, 128>}, {pipeline_mode = #tpu.pipeline_mode<synchronous>, transform_indices = @transform_4, window_bounds = array<i64: 1, 128>}, {transform_indices = @transform_5, window_bounds = array<i64: 304, 128>}]} {
    %c0 = arith.constant 0 : index
    %c0_0 = arith.constant 0 : index
    %0 = vector.load %arg1[%c0, %c0_0] : memref<304x16xf32, #tpu.memory_space<vmem>>, vector<304x16xf32>
    %1 = arith.truncf %0 : vector<304x16xf32> to vector<304x16xbf16>
    %c0_1 = arith.constant 0 : index
    %c0_2 = arith.constant 0 : index
    %2 = vector.load %arg2[%c0_1, %c0_2] : memref<144x128xbf16, #tpu.memory_space<vmem>>, vector<16x128xbf16>
    %cst = arith.constant dense<0.000000e+00> : vector<304x128xf32>
    %3 = tpu.matmul %1, %2, %cst {dimension_numbers = #tpu.dot_dimension_numbers<[1], [0], [0], [1], [0, 0, 1, 1], [], []>} : vector<304x16xbf16>, vector<16x128xbf16>, vector<304x128xf32> -> vector<304x128xf32>
    %c0_3 = arith.constant 0 : index
    %c0_4 = arith.constant 0 : index
    %4 = vector.load %arg4[%c0_3, %c0_4] : memref<2x128xf32, #tpu.memory_space<vmem>>, vector<1x128xf32>
    %5 = vector.broadcast %4 : vector<1x128xf32> to vector<304x128xf32>
    %6 = arith.addf %3, %5 : vector<304x128xf32>
    %cst_5 = arith.constant 0.000000e+00 : f32
    %7 = vector.broadcast %cst_5 : f32 to vector<304x128xf32>
    %8 = arith.maximumf %6, %7 : vector<304x128xf32>
    %9 = arith.truncf %8 : vector<304x128xf32> to vector<304x128xbf16>
    %c16 = arith.constant 16 : index
    %c0_6 = arith.constant 0 : index
    %10 = vector.load %arg2[%c16, %c0_6] : memref<144x128xbf16, #tpu.memory_space<vmem>>, vector<128x128xbf16>
    %cst_7 = arith.constant dense<0.000000e+00> : vector<304x128xf32>
    %11 = tpu.matmul %9, %10, %cst_7 {dimension_numbers = #tpu.dot_dimension_numbers<[1], [0], [0], [1], [0, 0, 1, 1], [], []>} : vector<304x128xbf16>, vector<128x128xbf16>, vector<304x128xf32> -> vector<304x128xf32>
    %c1 = arith.constant 1 : index
    %c0_8 = arith.constant 0 : index
    %12 = vector.load %arg4[%c1, %c0_8] : memref<2x128xf32, #tpu.memory_space<vmem>>, vector<1x128xf32>
    %13 = vector.broadcast %12 : vector<1x128xf32> to vector<304x128xf32>
    %14 = arith.addf %11, %13 : vector<304x128xf32>
    %cst_9 = arith.constant 0.000000e+00 : f32
    %15 = vector.broadcast %cst_9 : f32 to vector<304x128xf32>
    %16 = arith.maximumf %14, %15 : vector<304x128xf32>
    %17 = arith.truncf %16 : vector<304x128xf32> to vector<304x128xbf16>
    %c0_10 = arith.constant 0 : index
    %c0_11 = arith.constant 0 : index
    %18 = vector.load %arg3[%c0_10, %c0_11] : memref<128x128xbf16, #tpu.memory_space<vmem>>, vector<128x128xbf16>
    %cst_12 = arith.constant dense<0.000000e+00> : vector<304x128xf32>
    %19 = tpu.matmul %17, %18, %cst_12 {dimension_numbers = #tpu.dot_dimension_numbers<[1], [0], [0], [1], [0, 0, 1, 1], [], []>} : vector<304x128xbf16>, vector<128x128xbf16>, vector<304x128xf32> -> vector<304x128xf32>
    %c0_13 = arith.constant 0 : index
    %c0_14 = arith.constant 0 : index
    %20 = vector.load %arg5[%c0_13, %c0_14] : memref<1x128xf32, #tpu.memory_space<vmem>>, vector<1x128xf32>
    %21 = vector.broadcast %20 : vector<1x128xf32> to vector<304x128xf32>
    %22 = arith.addf %19, %21 : vector<304x128xf32>
    %23 = math.tanh %22 : vector<304x128xf32>
    %c0_15 = arith.constant 0 : index
    %c0_16 = arith.constant 0 : index
    %24 = vector.load %arg6[%c0_15, %c0_16] : memref<304x128xf32, #tpu.memory_space<vmem>>, vector<304x128xf32>
    tpu.vector_store %arg6[%c0_15, %c0_16], %23 {strides = array<i32>} : memref<304x128xf32, #tpu.memory_space<vmem>>, vector<304x128xf32>,
    return
  }
  func.func @transform_0(%arg0: i32) -> (i32, i32) {
    %c0_i32 = arith.constant 0 : i32
    %c0_i32_0 = arith.constant 0 : i32
    return %arg0, %c0_i32 : i32, i32
  }
  func.func @transform_1(%arg0: i32) -> (i32, i32) {
    %c0_i32 = arith.constant 0 : i32
    %c0_i32_0 = arith.constant 0 : i32
    %c0_i32_1 = arith.constant 0 : i32
    return %c0_i32, %c0_i32_0 : i32, i32
  }
  func.func @transform_2(%arg0: i32) -> (i32, i32) {
    %c0_i32 = arith.constant 0 : i32
    %c0_i32_0 = arith.constant 0 : i32
    %c0_i32_1 = arith.constant 0 : i32
    return %c0_i32, %c0_i32_0 : i32, i32
  }
  func.func @transform_3(%arg0: i32) -> (i32, i32) {
    %c0_i32 = arith.constant 0 : i32
    %c0_i32_0 = arith.constant 0 : i32
    %c0_i32_1 = arith.constant 0 : i32
    return %c0_i32, %c0_i32_0 : i32, i32
  }
  func.func @transform_4(%arg0: i32) -> (i32, i32) {
    %c0_i32 = arith.constant 0 : i32
    %c0_i32_0 = arith.constant 0 : i32
    %c0_i32_1 = arith.constant 0 : i32
    return %c0_i32, %c0_i32_0 : i32, i32
  }
  func.func @transform_5(%arg0: i32) -> (i32, i32) {
    %c0_i32 = arith.constant 0 : i32
    %c0_i32_0 = arith.constant 0 : i32
    return %arg0, %c0_i32 : i32, i32
  }
}

</mosaic_0001>

<bundles_post_ra>
// kernel: tpu_custom_call.1
= control target key start
LH: loop header
LB: loop body
LE: loop exit
PB: predicated region body
PF: predicated region fallthrough
CT: control target
= control target key end

     0   :  { %v1550_v1 = vmov 0.0   ;;  %vm1551_vm0 = vmmov 0   ;;  %vm92_vm1 = vcmask 130048   ;;  %s2060_s0 = inlined_call_operand.vmem [shape: f32[300,16], index: 0, kind: input, shape index: {}]   ;;  %s2061_s1 = inlined_call_operand.vmem [shape: bf16[144,128], index: 1, kind: input, shape index: {}]   ;;  %s2062_s2 = inlined_call_operand.vmem [shape: bf16[128,128], index: 2, kind: input, shape index: {}]   ;;  %s2063_s3 = inlined_call_operand.vmem [shape: f32[2,128], index: 3, kind: input, shape index: {}]   ;;  %s2064_s4 = inlined_call_operand.vmem [shape: f32[1,128], index: 4, kind: input, shape index: {}]   ;;  %s2065_s5 = inlined_call_operand.hbm [shape: f32[300,128], index: 5, kind: output, shape index: {}]  }
   0x1   :  { %v1433_v0 = vld [vmem:[%s2061_s1] sm:$0xff]   ;;  %1164 = vmatprep.subr.bf16.mxu0 %v1550_v1  ;;  %v23_v3 = vld [vmem:[%s2060_s0 + $0x8] sm:$0xff]  ;;  %1426 = vmatprep.subr.bf16.mxu1 %v1550_v1  ;;  %v24_v5 = vld [vmem:[%s2060_s0 + $0x10] sm:$0xff] }
   0x2   :  { %v22_v2 = vld [vmem:[%s2060_s0] sm:$0xff]  ;;  %1165 = vmatpush3.bf16.msra.mxu0 %v1433_v0  ;;  %1166 = vmatprep.mubr.msk.bf16.mxu0 %vm1551_vm0, %v1550_v1  ;;  %v25_v6 = vld [vmem:[%s2060_s0 + $0x18] sm:$0xff]  ;;  %v43_v8 = vld [vmem:[%s2060_s0 + $0xa8] sm:$0xff] }
   0x3   :  { %v60_v4 = vpack.c.bf16 %v23_v3, %v22_v2  ;;  %1427 = vmatpush3.bf16.msra.mxu1 %v1433_v0  ;;  %1206 = vmatprep.mubr.msk.bf16.mxu1 %vm1551_vm0, %v1550_v1  ;;  %v42_v7 = vld [vmem:[%s2060_s0 + $0xa0] sm:$0xff]  ;;  %v61_v9 = vpack.c.bf16 %v25_v6, %v24_v5  ;;  %v44_v11 = vld [vmem:[%s2060_s0 + $0xb0] sm:$0xff]  ;;  %v45_v12 = vld [vmem:[%s2060_s0 + $0xb8] sm:$0xff] }
   0x4   :  { %1242 = vmatprep.subr.bf16.mxu1 %v1550_v1  ;;  %1334 = vmatprep.subr.bf16.mxu0 %v1550_v1  ;;  %v70_v10 = vpack.c.bf16 %v43_v8, %v42_v7  ;;  %v26_v13 = vld [vmem:[%s2060_s0 + $0x20] sm:$0xff]  ;;  %v27_v14 = vld [vmem:[%s2060_s0 + $0x28] sm:$0xff]  ;;  %v71_v16 = vpack.c.bf16 %v45_v12, %v44_v11  ;;  %v1435_v17 = vld [vmem:[%s2061_s1 + $0x10] sm:$0xff]  }
   0x5   :  { %1167 = vmatmul.mubr.msk.bf16.vlgmr.msra.gmra.mrb[0].mxu0 %vm92_vm1, %v60_v4  ;;  %v1434_v15 = vld [vmem:[%s2061_s1 + $0x8] sm:$0xff]   ;;  %v62_v18 = vpack.c.bf16 %v27_v14, %v26_v13  ;;  %v46_v19 = vld [vmem:[%s2060_s0 + $0xc0] sm:$0xff]  ;;  %v28_v20 = vld [vmem:[%s2060_s0 + $0x30] sm:$0xff] }
   0x6   :  { %1170 = vmatprep.mubr.msk.bf16.mxu0 %vm1551_vm0, %v1550_v1  ;;  %1207 = vmatmul.mubr.msk.bf16.vlgmr.msra.gmra.mrb[0].mxu1 %vm92_vm1, %v70_v10  ;;  %v29_v21 = vld [vmem:[%s2060_s0 + $0x38] sm:$0xff]  ;;  %v47_v22 = vld [vmem:[%s2060_s0 + $0xc8] sm:$0xff]  ;;  %v1437_v24 = vld [vmem:[%s2061_s1 + $0x20] sm:$0xff]  }
   0x7   :  { %1210 = vmatprep.mubr.msk.bf16.mxu1 %vm1551_vm0, %v1550_v1  ;;  %1243 = vmatpush3.bf16.msra.mxu1 %v1434_v15  ;;  %v1436_v23 = vld [vmem:[%s2061_s1 + $0x18] sm:$0xff]   ;;  %v72_v25 = vpack.c.bf16 %v47_v22, %v46_v19  ;;  %v63_v26 = vpack.c.bf16 %v29_v21, %v28_v20 }
   0x8   :  { %1244 = vmatprep.subr.bf16.mxu1 %v1550_v1 }
   0xb   :  { %1245 = vmatpush3.bf16.msra.mxu1 %v1435_v17 }
   0xc   :  { %1246 = vmatprep.subr.bf16.mxu1 %v1550_v1 }
   0xd   :  { %1171 = vmatmul.mubr.msk.bf16.gmra.mrb[4].mxu0 %vm92_vm1, %v61_v9 }
   0xe   :  { %1174 = vmatprep.mubr.msk.bf16.mxu0 %vm1551_vm0, %v1550_v1  ;;  %1211 = vmatmul.mubr.msk.bf16.gmra.mrb[4].mxu1 %vm92_vm1, %v71_v16 }
   0xf   :  { %1214 = vmatprep.mubr.msk.bf16.mxu1 %vm1551_vm0, %v1550_v1  ;;  %1247 = vmatpush3.bf16.msra.mxu1 %v1436_v23 }
  0x10   :  { %1248 = vmatprep.subr.bf16.mxu1 %v1550_v1 }
  0x15   :  { %1175 = vmatmul.mubr.msk.bf16.gmra.mrb[8].mxu0 %vm92_vm1, %v62_v18 }
  0x16   :  { %1178 = vmatprep.mubr.msk.bf16.mxu0 %vm1551_vm0, %v1550_v1  ;;  %1215 = vmatmul.mubr.msk.bf16.gmra.mrb[8].mxu1 %vm92_vm1, %v72_v25 }
  0x17   :  { %10 = vsyncpa [#allocation3], 0  ;;  %1218 = vmatprep.mubr.msk.bf16.mxu1 %vm1551_vm0, %v1550_v1  ;;  %v48_v27 = vld [vmem:[%s2060_s0 + $0xd0] sm:$0xff]  ;;  %v49_v28 = vld [vmem:[%s2060_s0 + $0xd8] sm:$0xff]  ;;  %1249 = vmatpush3.bf16.msra.mxu1 %v1437_v24 }
  0x18   :  { %v1438_v29 = vld [vmem:[%s2061_s1 + $0x28] sm:$0xff]   ;;  %1250 = vmatprep.subr.bf16.mxu1 %v1550_v1  ;;  %v30_v30 = vld [vmem:[%s2060_s0 + $0x40] sm:$0xff]  ;;  %v73_v32 = vpack.c.bf16 %v49_v28, %v48_v27  ;;  %v1439_v33 = vld [vmem:[%s2061_s1 + $0x30] sm:$0xff]  }
  0x19   :  { %v31_v31 = vld [vmem:[%s2060_s0 + $0x48] sm:$0xff]  ;;  %v50_v35 = vld [vmem:[%s2060_s0 + $0xe0] sm:$0xff]  ;;  %v1440_v37 = vld [vmem:[%s2061_s1 + $0x38] sm:$0xff]  }
  0x1a   :  { %v64_v34 = vpack.c.bf16 %v31_v31, %v30_v30  ;;  %v51_v36 = vld [vmem:[%s2060_s0 + $0xe8] sm:$0xff]  ;;  %v32_v38 = vld [vmem:[%s2060_s0 + $0x50] sm:$0xff]  ;;  %v33_v39 = vld [vmem:[%s2060_s0 + $0x58] sm:$0xff] }
  0x1b   :  { %1251 = vmatpush3.bf16.msra.mxu1 %v1438_v29  ;;  %v74_v40 = vpack.c.bf16 %v51_v36, %v50_v35  ;;  %v65_v41 = vpack.c.bf16 %v33_v39, %v32_v38  ;;  %v52_v42 = vld [vmem:[%s2060_s0 + $0xf0] sm:$0xff]  ;;  %v53_v43 = vld [vmem:[%s2060_s0 + $0xf8] sm:$0xff]  ;;  %v34_v44 = vld [vmem:[%s2060_s0 + $0x60] sm:$0xff] }
  0x1c   :  { %1252 = vmatprep.subr.bf16.mxu1 %v1550_v1  ;;  %v35_v45 = vld [vmem:[%s2060_s0 + $0x68] sm:$0xff]  ;;  %v75_v46 = vpack.c.bf16 %v53_v43, %v52_v42  ;;  %v54_v48 = vld [vmem:[%s2060_s0 + $0x100] sm:$0xff]  ;;  %v36_v50 = vld [vmem:[%s2060_s0 + $0x70] sm:$0xff] }
  0x1d   :  { %1179 = vmatmul.mubr.msk.bf16.gmra.mrb[12].mxu0 %vm92_vm1, %v63_v26  ;;  %v66_v47 = vpack.c.bf16 %v35_v45, %v34_v44  ;;  %v55_v49 = vld [vmem:[%s2060_s0 + $0x108] sm:$0xff]  ;;  %v37_v51 = vld [vmem:[%s2060_s0 + $0x78] sm:$0xff]  ;;  %v56_v54 = vld [vmem:[%s2060_s0 + $0x110] sm:$0xff] }
  0x1e   :  { %1182 = vmatprep.mubr.msk.bf16.mxu0 %vm1551_vm0, %v1550_v1  ;;  %1219 = vmatmul.mubr.msk.bf16.gmra.mrb[12].mxu1 %vm92_vm1, %v73_v32  ;;  %v76_v52 = vpack.c.bf16 %v55_v49, %v54_v48  ;;  %v67_v53 = vpack.c.bf16 %v37_v51, %v36_v50  ;;  %v57_v55 = vld [vmem:[%s2060_s0 + $0x118] sm:$0xff]  ;;  %v38_v56 = vld [vmem:[%s2060_s0 + $0x80] sm:$0xff]  ;;  %v39_v57 = vld [vmem:[%s2060_s0 + $0x88] sm:$0xff] }
  0x1f   :  { %1222 = vmatprep.mubr.msk.bf16.mxu1 %vm1551_vm0, %v1550_v1  ;;  %1253 = vmatpush3.bf16.msra.mxu1 %v1439_v33  ;;  %v77_v58 = vpack.c.bf16 %v57_v55, %v56_v54  ;;  %v68_v59 = vpack.c.bf16 %v39_v57, %v38_v56  ;;  %v58_v60 = vld [vmem:[%s2060_s0 + $0x120] sm:$0xff]  ;;  %v59_v61 = vld [vmem:[%s2060_s0 + $0x128] sm:$0xff]  ;;  %v40_v62 = vld [vmem:[%s2060_s0 + $0x90] sm:$0xff] }
  0x20   :  { %1254 = vmatprep.subr.bf16.mxu1 %v1550_v1  ;;  %v41_v63 = vld [vmem:[%s2060_s0 + $0x98] sm:$0xff]  ;;  %v78_v0 = vpack.c.bf16 %v59_v61, %v58_v60  ;;  %v1441_v3 = vld [vmem:[%s2061_s1 + $0x40] sm:$0xff]   ;;  %v1443_v61 = vld [vmem:[%s2062_s2 + $0x8] sm:$0xff]  }
  0x21   :  { %v69_v2 = vpack.c.bf16 %v41_v63, %v40_v62  ;;  %v1801_v4 = vld [vmem:[%s2063_s3] ss:$0 sm:$0xff] }
  0x22   :  { %v1442_v42 = vld [vmem:[%s2062_s2] sm:$0xff]  }
  0x23   :  { %1255 = vmatpush3.bf16.msra.mxu1 %v1440_v37  ;;  %1335 = vmatpush3.bf16.msra.mxu0 %v1442_v42 }
  0x24   :  { %1256 = vmatprep.subr.bf16.mxu1 %v1550_v1  ;;  %1336 = vmatprep.subr.bf16.mxu0 %v1550_v1 }
  0x25   :  { %1183 = vmatmul.mubr.msk.bf16.gmra.mrb[16].mxu0 %vm92_vm1, %v64_v34 }
  0x26   :  { %1186 = vmatprep.mubr.msk.bf16.mxu0 %vm1551_vm0, %v1550_v1  ;;  %1223 = vmatmul.mubr.msk.bf16.gmra.mrb[16].mxu1 %vm92_vm1, %v74_v40 }
  0x27   :  { %1226 = vmatprep.mubr.msk.bf16.mxu1 %vm1551_vm0, %v1550_v1  ;;  %1257 = vmatpush3.bf16.msra.mxu1 %v1441_v3  ;;  %v1444_v3 = vld [vmem:[%s2062_s2 + $0x10] sm:$0xff]  }
  0x28   :  { %1337 = vmatpush3.bf16.msra.mxu0 %v1443_v61 }
  0x29   :  { %1338 = vmatprep.subr.bf16.mxu0 %v1550_v1 }
  0x2c   :  { %1339 = vmatpush3.bf16.msra.mxu0 %v1444_v3 }
  0x2d   :  { %1187 = vmatmul.mubr.msk.bf16.gmra.mrb[20].mxu0 %vm92_vm1, %v65_v41  ;;  %1340 = vmatprep.subr.bf16.mxu0 %v1550_v1 }
  0x2e   :  { %1190 = vmatprep.mubr.msk.bf16.mxu0 %vm1551_vm0, %v1550_v1  ;;  %1227 = vmatmul.mubr.msk.bf16.gmra.mrb[20].mxu1 %vm92_vm1, %v75_v46 }
  0x2f   :  { %1230 = vmatprep.mubr.msk.bf16.mxu1 %vm1551_vm0, %v1550_v1 }
  0x35   :  { %1191 = vmatmul.mubr.msk.bf16.gmra.mrb[24].mxu0 %vm92_vm1, %v66_v47 }
  0x36   :  { %1194 = vmatprep.mubr.msk.bf16.mxu0 %vm1551_vm0, %v1550_v1  ;;  %1231 = vmatmul.mubr.msk.bf16.gmra.mrb[24].mxu1 %vm92_vm1, %v76_v52 }
  0x37   :  { %1234 = vmatprep.mubr.msk.bf16.mxu1 %vm1551_vm0, %v1550_v1 }
  0x3d   :  { %1195 = vmatmul.mubr.msk.bf16.gmra.mrb[28].mxu0 %vm92_vm1, %v67_v53 }
  0x3e   :  { %1198 = vmatprep.mubr.msk.bf16.mxu0 %vm1551_vm0, %v1550_v1  ;;  %1235 = vmatmul.mubr.msk.bf16.gmra.mrb[28].mxu1 %vm92_vm1, %v77_v58 }
  0x3f   :  { %1238 = vmatprep.mubr.msk.bf16.mxu1 %vm1551_vm0, %v1550_v1 }
  0x45   :  { %1199 = vmatmul.mubr.msk.bf16.gmra.mrb[32].mxu0 %vm92_vm1, %v68_v59 }
  0x46   :  { %1202 = vmatprep.mubr.msk.bf16.mxu0 %vm1551_vm0, %v1550_v1  ;;  %1239 = vmatmul.mubr.msk.bf16.gmra.mrb[32].mxu1 %vm92_vm1, %v78_v0 }
  0x47   :  { %1258 = vmatprep.mubr.msk.bf16.mxu1 %vm1551_vm0, %v1550_v1 }
  0x4d   :  { %1203 = vmatmul.mubr.msk.bf16.gmra.mrb[36].mxu0 %vm92_vm1, %v69_v2 }
  0x4e   :  { %1350 = vmatprep.mubr.msk.bf16.mxu0 %vm1551_vm0, %v1550_v1 }
  0xd8   :  { %v184_v5 = vpop.f32.mrb[0].mxu0 }
  0xd9   :  { %v185_v6 = vadd.f32 %v1801_v4, %v184_v5  ;;  %v1168_v7 = vpop.f32.mrb[1].mxu0  ;;  %v264_v13 = vpop.f32.mrb[0].mxu1 }
  0xda   :  { %v187_v8 = vpop.f32.mrb[2].mxu0  ;;  %v265_v15 = vadd.f32 %v1801_v4, %v264_v13  ;;  %v1208_v16 = vpop.f32.mrb[1].mxu1 }
  0xdb   :  { %v188_v9 = vadd.f32 %v1801_v4, %v187_v8  ;;  %v1169_v10 = vpop.f32.mrb[3].mxu0  ;;  %v335_v11 = vmax.f32 %v185_v6, 0.0  ;;  %v267_v18 = vpop.f32.mrb[2].mxu1 }
  0xdc   :  { %v355_v21 = vmax.f32 %v265_v15, 0.0  ;;  %v268_v22 = vadd.f32 %v1801_v4, %v267_v18  ;;  %v1209_v23 = vpop.f32.mrb[3].mxu1 }
  0xdd   :  { %v336_v12 = vmax.f32 %v188_v9, 0.0 }
  0xde   :  { %v356_v27 = vmax.f32 %v268_v22, 0.0 }
  0xdf   :  { %v373_v14 = vpack.c.bf16 %v336_v12, %v335_v11  ;;  %v1445_v12 = vld [vmem:[%s2062_s2 + $0x18] sm:$0xff]  }
  0xe0   :  { %v192_v17 = vpop.f32.mrb[4].mxu0  ;;  %v1811_v30 = vpack.c.bf16 %v356_v27, %v355_v21  ;;  %1341 = vmatpush3.bf16.msra.mxu0 %v1445_v12 }
  0xe1   :  { %v193_v19 = vadd.f32 %v1801_v4, %v192_v17  ;;  %v1172_v20 = vpop.f32.mrb[5].mxu0  ;;  %1259 = vmatmul.mubr.bf16.vlgmr.msra.gmra.mrb[36].mxu1 %v373_v14  ;;  %v272_v31 = vpop.f32.mrb[4].mxu1  ;;  %1342 = vmatprep.subr.bf16.mxu0 %v1550_v1 }
  0xe2   :  { %v195_v24 = vpop.f32.mrb[6].mxu0  ;;  %1262 = vmatprep.mubr.msk.bf16.mxu1 %vm1551_vm0, %v1550_v1  ;;  %v273_v33 = vadd.f32 %v1801_v4, %v272_v31  ;;  %v1212_v34 = vpop.f32.mrb[5].mxu1 }
  0xe3   :  { %v196_v25 = vadd.f32 %v1801_v4, %v195_v24  ;;  %v1173_v26 = vpop.f32.mrb[7].mxu0  ;;  %v337_v28 = vmax.f32 %v193_v19, 0.0  ;;  %v275_v36 = vpop.f32.mrb[6].mxu1  ;;  %v1446_v24 = vld [vmem:[%s2062_s2 + $0x20] sm:$0xff]  }
  0xe4   :  { %v357_v39 = vmax.f32 %v273_v33, 0.0  ;;  %v276_v40 = vadd.f32 %v1801_v4, %v275_v36  ;;  %v1213_v41 = vpop.f32.mrb[7].mxu1  ;;  %1343 = vmatpush3.bf16.msra.mxu0 %v1446_v24  ;;  %v1447_v33 = vld [vmem:[%s2062_s2 + $0x28] sm:$0xff]  }
  0xe5   :  { %v338_v29 = vmax.f32 %v196_v25, 0.0  ;;  %1344 = vmatprep.subr.bf16.mxu0 %v1550_v1 }
  0xe6   :  { %v358_v46 = vmax.f32 %v276_v40, 0.0 }
  0xe7   :  { %v374_v32 = vpack.c.bf16 %v338_v29, %v337_v28 }
  0xe8   :  { %v200_v35 = vpop.f32.mrb[8].mxu0  ;;  %v1823_v49 = vpack.c.bf16 %v358_v46, %v357_v39  ;;  %1345 = vmatpush3.bf16.msra.mxu0 %v1447_v33 }
  0xe9   :  { %v201_v37 = vadd.f32 %v1801_v4, %v200_v35  ;;  %v1176_v38 = vpop.f32.mrb[9].mxu0  ;;  %1263 = vmatmul.mubr.bf16.gmra.mrb[40].mxu1 %v374_v32  ;;  %v280_v50 = vpop.f32.mrb[8].mxu1  ;;  %1346 = vmatprep.subr.bf16.mxu0 %v1550_v1 }
  0xea   :  { %v203_v43 = vpop.f32.mrb[10].mxu0  ;;  %1266 = vmatprep.mubr.msk.bf16.mxu1 %vm1551_vm0, %v1550_v1  ;;  %v281_v52 = vadd.f32 %v1801_v4, %v280_v50  ;;  %v1216_v53 = vpop.f32.mrb[9].mxu1 }
  0xeb   :  { %v204_v44 = vadd.f32 %v1801_v4, %v203_v43  ;;  %v1177_v45 = vpop.f32.mrb[11].mxu0  ;;  %v339_v47 = vmax.f32 %v201_v37, 0.0  ;;  %v283_v55 = vpop.f32.mrb[10].mxu1 }
  0xec   :  { %v359_v58 = vmax.f32 %v281_v52, 0.0  ;;  %v284_v59 = vadd.f32 %v1801_v4, %v283_v55  ;;  %v1217_v60 = vpop.f32.mrb[11].mxu1  ;;  %v1448_v45 = vld [vmem:[%s2062_s2 + $0x30] sm:$0xff]  }
  0xed   :  { %v340_v48 = vmax.f32 %v204_v44, 0.0  ;;  %1347 = vmatpush3.bf16.msra.mxu0 %v1448_v45 }
  0xee   :  { %v360_v2 = vmax.f32 %v284_v59, 0.0  ;;  %1348 = vmatprep.subr.bf16.mxu0 %v1550_v1 }
  0xef   :  { %v375_v51 = vpack.c.bf16 %v340_v48, %v339_v47 }
  0xf0   :  { %v208_v54 = vpop.f32.mrb[12].mxu0  ;;  %v1838_v7 = vpack.c.bf16 %v360_v2, %v359_v58 }
  0xf1   :  { %v209_v56 = vadd.f32 %v1801_v4, %v208_v54  ;;  %v1180_v57 = vpop.f32.mrb[13].mxu0  ;;  %1267 = vmatmul.mubr.bf16.gmra.mrb[44].mxu1 %v375_v51  ;;  %v288_v8 = vpop.f32.mrb[12].mxu1  ;;  %v1449_v54 = vld [vmem:[%s2062_s2 + $0x38] sm:$0xff]  }
  0xf2   :  { %v211_v62 = vpop.f32.mrb[14].mxu0  ;;  %1270 = vmatprep.mubr.msk.bf16.mxu1 %vm1551_vm0, %v1550_v1  ;;  %v289_v10 = vadd.f32 %v1801_v4, %v288_v8  ;;  %v1220_v11 = vpop.f32.mrb[13].mxu1  ;;  %1349 = vmatpush3.bf16.msra.mxu0 %v1449_v54 }
  0xf3   :  { %v212_v63 = vadd.f32 %v1801_v4, %v211_v62  ;;  %v1181_v0 = vpop.f32.mrb[15].mxu0  ;;  %v341_v5 = vmax.f32 %v209_v56, 0.0  ;;  %v291_v14 = vpop.f32.mrb[14].mxu1 }
  0xf4   :  { %v361_v17 = vmax.f32 %v289_v10, 0.0  ;;  %v292_v18 = vadd.f32 %v1801_v4, %v291_v14  ;;  %v1221_v19 = vpop.f32.mrb[15].mxu1 }
  0xf5   :  { %v342_v6 = vmax.f32 %v212_v63, 0.0 }
  0xf6   :  { %v362_v23 = vmax.f32 %v292_v18, 0.0 }
  0xf7   :  { %v376_v9 = vpack.c.bf16 %v342_v6, %v341_v5 }
  0xf8   :  { %v216_v13 = vpop.f32.mrb[16].mxu0  ;;  %v1854_v27 = vpack.c.bf16 %v362_v23, %v361_v17 }
  0xf9   :  { %v217_v15 = vadd.f32 %v1801_v4, %v216_v13  ;;  %v1184_v16 = vpop.f32.mrb[17].mxu0  ;;  %1271 = vmatmul.mubr.bf16.gmra.mrb[48].mxu1 %v376_v9  ;;  %v296_v28 = vpop.f32.mrb[16].mxu1 }
  0xfa   :  { %v219_v20 = vpop.f32.mrb[18].mxu0  ;;  %1274 = vmatprep.mubr.msk.bf16.mxu1 %vm1551_vm0, %v1550_v1  ;;  %v297_v31 = vadd.f32 %v1801_v4, %v296_v28  ;;  %v1224_v32 = vpop.f32.mrb[17].mxu1 }
  0xfb   :  { %v220_v21 = vadd.f32 %v1801_v4, %v219_v20  ;;  %v1185_v22 = vpop.f32.mrb[19].mxu0  ;;  %v343_v25 = vmax.f32 %v217_v15, 0.0  ;;  %v299_v35 = vpop.f32.mrb[18].mxu1 }
  0xfc   :  { %v363_v38 = vmax.f32 %v297_v31, 0.0  ;;  %v300_v39 = vadd.f32 %v1801_v4, %v299_v35  ;;  %v1225_v40 = vpop.f32.mrb[19].mxu1 }
  0xfd   :  { %v344_v26 = vmax.f32 %v220_v21, 0.0 }
  0xfe   :  { %v364_v44 = vmax.f32 %v300_v39, 0.0 }
  0xff   :  { %v377_v29 = vpack.c.bf16 %v344_v26, %v343_v25 }
 0x100   :  { %v224_v34 = vpop.f32.mrb[20].mxu0  ;;  %v1870_v48 = vpack.c.bf16 %v364_v44, %v363_v38 }
 0x101   :  { %v225_v36 = vadd.f32 %v1801_v4, %v224_v34  ;;  %v1188_v37 = vpop.f32.mrb[21].mxu0  ;;  %1275 = vmatmul.mubr.bf16.gmra.mrb[52].mxu1 %v377_v29  ;;  %v304_v50 = vpop.f32.mrb[20].mxu1 }
 0x102   :  { %v227_v41 = vpop.f32.mrb[22].mxu0  ;;  %1278 = vmatprep.mubr.msk.bf16.mxu1 %vm1551_vm0, %v1550_v1  ;;  %v305_v52 = vadd.f32 %v1801_v4, %v304_v50  ;;  %v1228_v53 = vpop.f32.mrb[21].mxu1 }
 0x103   :  { %v228_v42 = vadd.f32 %v1801_v4, %v227_v41  ;;  %v1189_v43 = vpop.f32.mrb[23].mxu0  ;;  %v345_v46 = vmax.f32 %v225_v36, 0.0  ;;  %v307_v56 = vpop.f32.mrb[22].mxu1 }
 0x104   :  { %v365_v59 = vmax.f32 %v305_v52, 0.0  ;;  %v308_v60 = vadd.f32 %v1801_v4, %v307_v56  ;;  %v1229_v61 = vpop.f32.mrb[23].mxu1 }
 0x105   :  { %v346_v47 = vmax.f32 %v228_v42, 0.0 }
 0x106   :  { %v366_v2 = vmax.f32 %v308_v60, 0.0 }
 0x107   :  { %v378_v51 = vpack.c.bf16 %v346_v47, %v345_v46 }
 0x108   :  { %v232_v55 = vpop.f32.mrb[24].mxu0  ;;  %v1882_v6 = vpack.c.bf16 %v366_v2, %v365_v59 }
 0x109   :  { %v233_v57 = vadd.f32 %v1801_v4, %v232_v55  ;;  %v1192_v58 = vpop.f32.mrb[25].mxu0  ;;  %1279 = vmatmul.mubr.bf16.gmra.mrb[56].mxu1 %v378_v51  ;;  %v312_v8 = vpop.f32.mrb[24].mxu1 }
 0x10a   :  { %v235_v62 = vpop.f32.mrb[26].mxu0  ;;  %1282 = vmatprep.mubr.msk.bf16.mxu1 %vm1551_vm0, %v1550_v1  ;;  %v313_v10 = vadd.f32 %v1801_v4, %v312_v8  ;;  %v1232_v11 = vpop.f32.mrb[25].mxu1 }
 0x10b   :  { %v236_v63 = vadd.f32 %v1801_v4, %v235_v62  ;;  %v1193_v0 = vpop.f32.mrb[27].mxu0  ;;  %v347_v3 = vmax.f32 %v233_v57, 0.0  ;;  %v315_v13 = vpop.f32.mrb[26].mxu1 }
 0x10c   :  { %v367_v16 = vmax.f32 %v313_v10, 0.0  ;;  %v316_v17 = vadd.f32 %v1801_v4, %v315_v13  ;;  %v1233_v18 = vpop.f32.mrb[27].mxu1 }
 0x10d   :  { %v348_v5 = vmax.f32 %v236_v63, 0.0 }
 0x10e   :  { %v368_v22 = vmax.f32 %v316_v17, 0.0 }
 0x10f   :  { %v379_v9 = vpack.c.bf16 %v348_v5, %v347_v3 }
 0x110   :  { %v240_v12 = vpop.f32.mrb[28].mxu0  ;;  %v389_v25 = vpack.c.bf16 %v368_v22, %v367_v16 }
 0x111   :  { %v241_v14 = vadd.f32 %v1801_v4, %v240_v12  ;;  %v1196_v15 = vpop.f32.mrb[29].mxu0  ;;  %1283 = vmatmul.mubr.bf16.gmra.mrb[60].mxu1 %v379_v9  ;;  %v320_v26 = vpop.f32.mrb[28].mxu1 }
 0x112   :  { %v243_v19 = vpop.f32.mrb[30].mxu0  ;;  %1286 = vmatprep.mubr.msk.bf16.mxu1 %vm1551_vm0, %v1550_v1  ;;  %v321_v29 = vadd.f32 %v1801_v4, %v320_v26  ;;  %v1236_v31 = vpop.f32.mrb[29].mxu1 }
 0x113   :  { %v244_v20 = vadd.f32 %v1801_v4, %v243_v19  ;;  %v1197_v21 = vpop.f32.mrb[31].mxu0  ;;  %v349_v23 = vmax.f32 %v241_v14, 0.0  ;;  %v323_v33 = vpop.f32.mrb[30].mxu1 }
 0x114   :  { %v369_v36 = vmax.f32 %v321_v29, 0.0  ;;  %v324_v37 = vadd.f32 %v1801_v4, %v323_v33  ;;  %v1237_v38 = vpop.f32.mrb[31].mxu1 }
 0x115   :  { %v350_v24 = vmax.f32 %v244_v20, 0.0 }
 0x116   :  { %v370_v42 = vmax.f32 %v324_v37, 0.0 }
 0x117   :  { %v380_v28 = vpack.c.bf16 %v350_v24, %v349_v23 }
 0x118   :  { %v248_v32 = vpop.f32.mrb[32].mxu0  ;;  %v390_v45 = vpack.c.bf16 %v370_v42, %v369_v36 }
 0x119   :  { %v249_v34 = vadd.f32 %v1801_v4, %v248_v32  ;;  %v1200_v35 = vpop.f32.mrb[33].mxu0  ;;  %1287 = vmatmul.mubr.bf16.gmra.mrb[64].mxu1 %v380_v28  ;;  %v328_v46 = vpop.f32.mrb[32].mxu1 }
 0x11a   :  { %v251_v39 = vpop.f32.mrb[34].mxu0  ;;  %1290 = vmatprep.mubr.msk.bf16.mxu1 %vm1551_vm0, %v1550_v1  ;;  %v329_v50 = vadd.f32 %v1801_v4, %v328_v46  ;;  %v1240_v51 = vpop.f32.mrb[33].mxu1 }
 0x11b   :  { %v252_v40 = vadd.f32 %v1801_v4, %v251_v39  ;;  %v1201_v41 = vpop.f32.mrb[35].mxu0  ;;  %v351_v43 = vmax.f32 %v249_v34, 0.0  ;;  %v331_v53 = vpop.f32.mrb[34].mxu1 }
 0x11c   :  { %v371_v56 = vmax.f32 %v329_v50, 0.0  ;;  %v332_v57 = vadd.f32 %v1801_v4, %v331_v53  ;;  %v1241_v58 = vpop.f32.mrb[35].mxu1 }
 0x11d   :  { %v352_v44 = vmax.f32 %v252_v40, 0.0 }
 0x11e   :  { %v372_v62 = vmax.f32 %v332_v57, 0.0 }
 0x11f   :  { %v381_v47 = vpack.c.bf16 %v352_v44, %v351_v43 }
 0x120   :  { %v256_v52 = vpop.f32.mrb[36].mxu0  ;;  %v391_v2 = vpack.c.bf16 %v372_v62, %v371_v56 }
 0x121   :  { %v257_v54 = vadd.f32 %v1801_v4, %v256_v52  ;;  %v1204_v55 = vpop.f32.mrb[37].mxu0  ;;  %1291 = vmatmul.mubr.bf16.gmra.mrb[68].mxu1 %v381_v47 }
 0x122   :  { %v259_v59 = vpop.f32.mrb[38].mxu0  ;;  %1294 = vmatprep.mubr.msk.bf16.mxu1 %vm1551_vm0, %v1550_v1 }
 0x123   :  { %v260_v60 = vadd.f32 %v1801_v4, %v259_v59  ;;  %v1205_v61 = vpop.f32.mrb[39].mxu0  ;;  %v353_v63 = vmax.f32 %v257_v54, 0.0  ;;  %v1929_v4 = vld [vmem:[%s2063_s3 + $0x1] ss:$0 sm:$0xff] }
 0x125   :  { %v354_v0 = vmax.f32 %v260_v60, 0.0 }
 0x127   :  { %v382_v3 = vpack.c.bf16 %v354_v0, %v353_v63 }
 0x129   :  { %1295 = vmatmul.mubr.bf16.gmra.mrb[72].mxu1 %v382_v3 }
 0x12a   :  { %1298 = vmatprep.mubr.msk.bf16.mxu1 %vm1551_vm0, %v1550_v1 }
 0x131   :  { %1299 = vmatmul.mubr.bf16.gmra.mrb[76].mxu1 %v1811_v30 }
 0x132   :  { %1302 = vmatprep.mubr.msk.bf16.mxu1 %vm1551_vm0, %v1550_v1 }
 0x139   :  { %1303 = vmatmul.mubr.bf16.gmra.mrb[80].mxu1 %v1823_v49 }
 0x13a   :  { %1306 = vmatprep.mubr.msk.bf16.mxu1 %vm1551_vm0, %v1550_v1 }
 0x141   :  { %1307 = vmatmul.mubr.bf16.gmra.mrb[84].mxu1 %v1838_v7 }
 0x142   :  { %1310 = vmatprep.mubr.msk.bf16.mxu1 %vm1551_vm0, %v1550_v1 }
 0x149   :  { %1311 = vmatmul.mubr.bf16.gmra.mrb[88].mxu1 %v1854_v27 }
 0x14a   :  { %1314 = vmatprep.mubr.msk.bf16.mxu1 %vm1551_vm0, %v1550_v1 }
 0x151   :  { %1315 = vmatmul.mubr.bf16.gmra.mrb[92].mxu1 %v1870_v48 }
 0x152   :  { %1318 = vmatprep.mubr.msk.bf16.mxu1 %vm1551_vm0, %v1550_v1 }
 0x159   :  { %1319 = vmatmul.mubr.bf16.gmra.mrb[96].mxu1 %v1882_v6 }
 0x15a   :  { %1322 = vmatprep.mubr.msk.bf16.mxu1 %vm1551_vm0, %v1550_v1 }
 0x161   :  { %1323 = vmatmul.mubr.bf16.gmra.mrb[100].mxu1 %v389_v25 }
 0x162   :  { %1326 = vmatprep.mubr.msk.bf16.mxu1 %vm1551_vm0, %v1550_v1 }
 0x169   :  { %1327 = vmatmul.mubr.bf16.gmra.mrb[104].mxu1 %v390_v45 }
 0x16a   :  { %1330 = vmatprep.mubr.msk.bf16.mxu1 %vm1551_vm0, %v1550_v1 }
 0x171   :  { %1331 = vmatmul.mubr.bf16.gmra.mrb[108].mxu1 %v391_v2 }
 0x1b4   :  { %v495_v30 = vpop.f32.mrb[36].mxu1 }
 0x1b5   :  { %v496_v49 = vadd.f32 %v1929_v4, %v495_v30  ;;  %v1260_v7 = vpop.f32.mrb[37].mxu1 }
 0x1b6   :  { %v498_v27 = vpop.f32.mrb[38].mxu1 }
 0x1b7   :  { %v499_v48 = vadd.f32 %v1929_v4, %v498_v27  ;;  %v1261_v5 = vpop.f32.mrb[39].mxu1  ;;  %v646_v6 = vmax.f32 %v496_v49, 0.0 }
 0x1b9   :  { %v647_v8 = vmax.f32 %v499_v48, 0.0 }
 0x1bb   :  { %v684_v9 = vpack.c.bf16 %v647_v8, %v646_v6 }
 0x1bc   :  { %v503_v10 = vpop.f32.mrb[40].mxu1 }
 0x1bd   :  { %v504_v11 = vadd.f32 %v1929_v4, %v503_v10  ;;  %v1264_v12 = vpop.f32.mrb[41].mxu1  ;;  %1351 = vmatmul.mubr.bf16.vlgmr.msra.gmra.mrb[40].mxu0 %v684_v9 }
 0x1be   :  { %v506_v13 = vpop.f32.mrb[42].mxu1  ;;  %1354 = vmatprep.mubr.msk.bf16.mxu0 %vm1551_vm0, %v1550_v1 }
 0x1bf   :  { %v507_v14 = vadd.f32 %v1929_v4, %v506_v13  ;;  %v1265_v15 = vpop.f32.mrb[43].mxu1  ;;  %v648_v16 = vmax.f32 %v504_v11, 0.0 }
 0x1c1   :  { %v649_v17 = vmax.f32 %v507_v14, 0.0 }
 0x1c3   :  { %v685_v18 = vpack.c.bf16 %v649_v17, %v648_v16 }
 0x1c4   :  { %v511_v19 = vpop.f32.mrb[44].mxu1 }
 0x1c5   :  { %v512_v20 = vadd.f32 %v1929_v4, %v511_v19  ;;  %v1268_v21 = vpop.f32.mrb[45].mxu1  ;;  %1355 = vmatmul.mubr.bf16.gmra.mrb[44].mxu0 %v685_v18 }
 0x1c6   :  { %v514_v22 = vpop.f32.mrb[46].mxu1  ;;  %1358 = vmatprep.mubr.msk.bf16.mxu0 %vm1551_vm0, %v1550_v1 }
 0x1c7   :  { %v515_v23 = vadd.f32 %v1929_v4, %v514_v22  ;;  %v1269_v24 = vpop.f32.mrb[47].mxu1  ;;  %v650_v25 = vmax.f32 %v512_v20, 0.0 }
 0x1c9   :  { %v651_v26 = vmax.f32 %v515_v23, 0.0 }
 0x1cb   :  { %v686_v28 = vpack.c.bf16 %v651_v26, %v650_v25 }
 0x1cc   :  { %v519_v29 = vpop.f32.mrb[48].mxu1 }
 0x1cd   :  { %v520_v31 = vadd.f32 %v1929_v4, %v519_v29  ;;  %v1272_v32 = vpop.f32.mrb[49].mxu1  ;;  %1359 = vmatmul.mubr.bf16.gmra.mrb[48].mxu0 %v686_v28 }
 0x1ce   :  { %v522_v33 = vpop.f32.mrb[50].mxu1  ;;  %1362 = vmatprep.mubr.msk.bf16.mxu0 %vm1551_vm0, %v1550_v1 }
 0x1cf   :  { %v523_v34 = vadd.f32 %v1929_v4, %v522_v33  ;;  %v1273_v35 = vpop.f32.mrb[51].mxu1  ;;  %v652_v36 = vmax.f32 %v520_v31, 0.0 }
 0x1d1   :  { %v653_v37 = vmax.f32 %v523_v34, 0.0 }
 0x1d3   :  { %v687_v38 = vpack.c.bf16 %v653_v37, %v652_v36 }
 0x1d4   :  { %v527_v39 = vpop.f32.mrb[52].mxu1 }
 0x1d5   :  { %v528_v40 = vadd.f32 %v1929_v4, %v527_v39  ;;  %v1276_v41 = vpop.f32.mrb[53].mxu1  ;;  %1363 = vmatmul.mubr.bf16.gmra.mrb[52].mxu0 %v687_v38 }
 0x1d6   :  { %v530_v42 = vpop.f32.mrb[54].mxu1  ;;  %1366 = vmatprep.mubr.msk.bf16.mxu0 %vm1551_vm0, %v1550_v1 }
 0x1d7   :  { %v531_v43 = vadd.f32 %v1929_v4, %v530_v42  ;;  %v1277_v44 = vpop.f32.mrb[55].mxu1  ;;  %v654_v45 = vmax.f32 %v528_v40, 0.0 }
 0x1d9   :  { %v655_v46 = vmax.f32 %v531_v43, 0.0 }
 0x1db   :  { %v688_v47 = vpack.c.bf16 %v655_v46, %v654_v45 }
 0x1dc   :  { %v535_v50 = vpop.f32.mrb[56].mxu1 }
 0x1dd   :  { %v536_v51 = vadd.f32 %v1929_v4, %v535_v50  ;;  %v1280_v52 = vpop.f32.mrb[57].mxu1  ;;  %1367 = vmatmul.mubr.bf16.gmra.mrb[56].mxu0 %v688_v47 }
 0x1de   :  { %v538_v53 = vpop.f32.mrb[58].mxu1  ;;  %1370 = vmatprep.mubr.msk.bf16.mxu0 %vm1551_vm0, %v1550_v1 }
 0x1df   :  { %v539_v54 = vadd.f32 %v1929_v4, %v538_v53  ;;  %v1281_v55 = vpop.f32.mrb[59].mxu1  ;;  %v656_v56 = vmax.f32 %v536_v51, 0.0 }
 0x1e1   :  { %v657_v57 = vmax.f32 %v539_v54, 0.0 }
 0x1e3   :  { %v689_v58 = vpack.c.bf16 %v657_v57, %v656_v56 }
 0x1e4   :  { %v543_v59 = vpop.f32.mrb[60].mxu1 }
 0x1e5   :  { %v544_v60 = vadd.f32 %v1929_v4, %v543_v59  ;;  %v1284_v61 = vpop.f32.mrb[61].mxu1  ;;  %1371 = vmatmul.mubr.bf16.gmra.mrb[60].mxu0 %v689_v58 }
 0x1e6   :  { %v546_v62 = vpop.f32.mrb[62].mxu1  ;;  %1374 = vmatprep.mubr.msk.bf16.mxu0 %vm1551_vm0, %v1550_v1 }
 0x1e7   :  { %v547_v63 = vadd.f32 %v1929_v4, %v546_v62  ;;  %v1285_v0 = vpop.f32.mrb[63].mxu1  ;;  %v658_v2 = vmax.f32 %v544_v60, 0.0 }
 0x1e9   :  { %v659_v3 = vmax.f32 %v547_v63, 0.0 }
 0x1eb   :  { %v690_v30 = vpack.c.bf16 %v659_v3, %v658_v2 }
 0x1ec   :  { %v551_v49 = vpop.f32.mrb[64].mxu1 }
 0x1ed   :  { %v552_v7 = vadd.f32 %v1929_v4, %v551_v49  ;;  %v1288_v27 = vpop.f32.mrb[65].mxu1  ;;  %1375 = vmatmul.mubr.bf16.gmra.mrb[64].mxu0 %v690_v30 }
 0x1ee   :  { %v554_v48 = vpop.f32.mrb[66].mxu1  ;;  %1378 = vmatprep.mubr.msk.bf16.mxu0 %vm1551_vm0, %v1550_v1 }
 0x1ef   :  { %v555_v5 = vadd.f32 %v1929_v4, %v554_v48  ;;  %v1289_v6 = vpop.f32.mrb[67].mxu1  ;;  %v660_v8 = vmax.f32 %v552_v7, 0.0 }
 0x1f1   :  { %v661_v9 = vmax.f32 %v555_v5, 0.0 }
 0x1f3   :  { %v691_v10 = vpack.c.bf16 %v661_v9, %v660_v8 }
 0x1f4   :  { %v559_v11 = vpop.f32.mrb[68].mxu1 }
 0x1f5   :  { %v560_v12 = vadd.f32 %v1929_v4, %v559_v11  ;;  %v1292_v13 = vpop.f32.mrb[69].mxu1  ;;  %1379 = vmatmul.mubr.bf16.gmra.mrb[68].mxu0 %v691_v10 }
 0x1f6   :  { %v562_v14 = vpop.f32.mrb[70].mxu1  ;;  %1382 = vmatprep.mubr.msk.bf16.mxu0 %vm1551_vm0, %v1550_v1 }
 0x1f7   :  { %v563_v15 = vadd.f32 %v1929_v4, %v562_v14  ;;  %v1293_v16 = vpop.f32.mrb[71].mxu1  ;;  %v662_v17 = vmax.f32 %v560_v12, 0.0 }
 0x1f9   :  { %v663_v18 = vmax.f32 %v563_v15, 0.0 }
 0x1fb   :  { %v692_v19 = vpack.c.bf16 %v663_v18, %v662_v17 }
 0x1fc   :  { %v567_v20 = vpop.f32.mrb[72].mxu1 }
 0x1fd   :  { %v568_v21 = vadd.f32 %v1929_v4, %v567_v20  ;;  %v1296_v22 = vpop.f32.mrb[73].mxu1  ;;  %1383 = vmatmul.mubr.bf16.gmra.mrb[72].mxu0 %v692_v19 }
 0x1fe   :  { %v570_v23 = vpop.f32.mrb[74].mxu1  ;;  %1386 = vmatprep.mubr.msk.bf16.mxu0 %vm1551_vm0, %v1550_v1 }
 0x1ff   :  { %v571_v24 = vadd.f32 %v1929_v4, %v570_v23  ;;  %v1297_v25 = vpop.f32.mrb[75].mxu1  ;;  %v664_v26 = vmax.f32 %v568_v21, 0.0 }
 0x201   :  { %v665_v28 = vmax.f32 %v571_v24, 0.0 }
 0x203   :  { %v693_v29 = vpack.c.bf16 %v665_v28, %v664_v26 }
 0x204   :  { %v575_v31 = vpop.f32.mrb[76].mxu1 }
 0x205   :  { %v576_v32 = vadd.f32 %v1929_v4, %v575_v31  ;;  %v1300_v33 = vpop.f32.mrb[77].mxu1  ;;  %1387 = vmatmul.mubr.bf16.gmra.mrb[76].mxu0 %v693_v29 }
 0x206   :  { %v578_v34 = vpop.f32.mrb[78].mxu1  ;;  %1390 = vmatprep.mubr.msk.bf16.mxu0 %vm1551_vm0, %v1550_v1 }
 0x207   :  { %v579_v35 = vadd.f32 %v1929_v4, %v578_v34  ;;  %v1301_v36 = vpop.f32.mrb[79].mxu1  ;;  %v666_v37 = vmax.f32 %v576_v32, 0.0 }
 0x209   :  { %v667_v38 = vmax.f32 %v579_v35, 0.0 }
 0x20b   :  { %v694_v39 = vpack.c.bf16 %v667_v38, %v666_v37 }
 0x20c   :  { %v583_v40 = vpop.f32.mrb[80].mxu1 }
 0x20d   :  { %v584_v41 = vadd.f32 %v1929_v4, %v583_v40  ;;  %v1304_v42 = vpop.f32.mrb[81].mxu1  ;;  %1391 = vmatmul.mubr.bf16.gmra.mrb[80].mxu0 %v694_v39 }
 0x20e   :  { %v586_v43 = vpop.f32.mrb[82].mxu1  ;;  %1394 = vmatprep.mubr.msk.bf16.mxu0 %vm1551_vm0, %v1550_v1 }
 0x20f   :  { %v587_v44 = vadd.f32 %v1929_v4, %v586_v43  ;;  %v1305_v45 = vpop.f32.mrb[83].mxu1  ;;  %v668_v46 = vmax.f32 %v584_v41, 0.0 }
 0x211   :  { %v669_v47 = vmax.f32 %v587_v44, 0.0 }
 0x213   :  { %v695_v50 = vpack.c.bf16 %v669_v47, %v668_v46 }
 0x214   :  { %v591_v51 = vpop.f32.mrb[84].mxu1 }
 0x215   :  { %v592_v52 = vadd.f32 %v1929_v4, %v591_v51  ;;  %v1308_v53 = vpop.f32.mrb[85].mxu1  ;;  %1395 = vmatmul.mubr.bf16.gmra.mrb[84].mxu0 %v695_v50 }
 0x216   :  { %v594_v54 = vpop.f32.mrb[86].mxu1  ;;  %1398 = vmatprep.mubr.msk.bf16.mxu0 %vm1551_vm0, %v1550_v1 }
 0x217   :  { %v595_v55 = vadd.f32 %v1929_v4, %v594_v54  ;;  %v1309_v56 = vpop.f32.mrb[87].mxu1  ;;  %v670_v57 = vmax.f32 %v592_v52, 0.0  ;;  %v2008_v52 = vld [vmem:[%s2064_s4] ss:$0 sm:$0xff]  ;;  %s1552_s4 = smov [#allocation2]  }
 0x218   :  { %s1040_s30 = sshll.u32 %s1552_s4, 4  ;;  %s1041_s30 = int_to_ptr.vmem [resolvable:$true] %s1040_s30 }
 0x219   :  { %v671_v58 = vmax.f32 %v595_v55, 0.0  ;;  %s1526_s6 = scalar_lea.vmem %s1041_s30, 4864  ;;  %p1531_p1 = scmp.lt.s32.totalorder %s1041_s30, %s1041_s30 }
 0x21a   :  { %p1527_p0 = scmp.ne.s32.totalorder %s1041_s30, %s1526_s6  ;;  %p1532_p2 = scmp.lt.s32.totalorder %s1526_s6, %s1526_s6 }
 0x21b   :  { %v696_v59 = vpack.c.bf16 %v671_v58, %v670_v57 }
 0x21c   :  { %v599_v60 = vpop.f32.mrb[88].mxu1  ;;  %p1533_p3 = por %p1532_p2, %p1531_p1 }
 0x21d   :  { %v600_v61 = vadd.f32 %v1929_v4, %v599_v60  ;;  %v1312_v62 = vpop.f32.mrb[89].mxu1  ;;  %1399 = vmatmul.mubr.bf16.gmra.mrb[88].mxu0 %v696_v59 }
 0x21e   :  { %v602_v63 = vpop.f32.mrb[90].mxu1  ;;  %1402 = vmatprep.mubr.msk.bf16.mxu0 %vm1551_vm0, %v1550_v1  ;;  %p1534_p4 = pnand %p1533_p3, %p1527_p0 }
 0x21f   :  { %v603_v0 = vadd.f32 %v1929_v4, %v602_v63  ;;  %v1313_v2 = vpop.f32.mrb[91].mxu1  ;;  %v672_v3 = vmax.f32 %v600_v61, 0.0 }
 0x221   :  { %v673_v30 = vmax.f32 %v603_v0, 0.0 }
 0x223   :  { %v697_v49 = vpack.c.bf16 %v673_v30, %v672_v3 }
 0x224   :  { %v607_v7 = vpop.f32.mrb[92].mxu1 }
 0x225   :  { %v608_v27 = vadd.f32 %v1929_v4, %v607_v7  ;;  %v1316_v48 = vpop.f32.mrb[93].mxu1  ;;  %1403 = vmatmul.mubr.bf16.gmra.mrb[92].mxu0 %v697_v49 }
 0x226   :  { %v610_v5 = vpop.f32.mrb[94].mxu1  ;;  %1406 = vmatprep.mubr.msk.bf16.mxu0 %vm1551_vm0, %v1550_v1 }
 0x227   :  { %v611_v6 = vadd.f32 %v1929_v4, %v610_v5  ;;  %v1317_v8 = vpop.f32.mrb[95].mxu1  ;;  %v674_v9 = vmax.f32 %v608_v27, 0.0 }
 0x229   :  { %v675_v10 = vmax.f32 %v611_v6, 0.0 }
 0x22b   :  { %v698_v11 = vpack.c.bf16 %v675_v10, %v674_v9 }
 0x22c   :  { %v615_v12 = vpop.f32.mrb[96].mxu1 }
 0x22d   :  { %v616_v13 = vadd.f32 %v1929_v4, %v615_v12  ;;  %v1320_v14 = vpop.f32.mrb[97].mxu1  ;;  %1407 = vmatmul.mubr.bf16.gmra.mrb[96].mxu0 %v698_v11 }
 0x22e   :  { %v618_v15 = vpop.f32.mrb[98].mxu1  ;;  %1410 = vmatprep.mubr.msk.bf16.mxu0 %vm1551_vm0, %v1550_v1 }
 0x22f   :  { %v619_v16 = vadd.f32 %v1929_v4, %v618_v15  ;;  %v1321_v17 = vpop.f32.mrb[99].mxu1  ;;  %v676_v18 = vmax.f32 %v616_v13, 0.0 }
 0x231   :  { %v677_v19 = vmax.f32 %v619_v16, 0.0 }
 0x233   :  { %v699_v20 = vpack.c.bf16 %v677_v19, %v676_v18 }
 0x234   :  { %v623_v21 = vpop.f32.mrb[100].mxu1 }
 0x235   :  { %v624_v22 = vadd.f32 %v1929_v4, %v623_v21  ;;  %v1324_v23 = vpop.f32.mrb[101].mxu1  ;;  %1411 = vmatmul.mubr.bf16.gmra.mrb[100].mxu0 %v699_v20 }
 0x236   :  { %v626_v24 = vpop.f32.mrb[102].mxu1  ;;  %1414 = vmatprep.mubr.msk.bf16.mxu0 %vm1551_vm0, %v1550_v1 }
 0x237   :  { %v627_v25 = vadd.f32 %v1929_v4, %v626_v24  ;;  %v1325_v26 = vpop.f32.mrb[103].mxu1  ;;  %v678_v28 = vmax.f32 %v624_v22, 0.0 }
 0x239   :  { %v679_v29 = vmax.f32 %v627_v25, 0.0 }
 0x23b   :  { %v700_v31 = vpack.c.bf16 %v679_v29, %v678_v28 }
 0x23c   :  { %v631_v32 = vpop.f32.mrb[104].mxu1 }
 0x23d   :  { %v632_v33 = vadd.f32 %v1929_v4, %v631_v32  ;;  %v1328_v34 = vpop.f32.mrb[105].mxu1  ;;  %1415 = vmatmul.mubr.bf16.gmra.mrb[104].mxu0 %v700_v31 }
 0x23e   :  { %v634_v35 = vpop.f32.mrb[106].mxu1  ;;  %1418 = vmatprep.mubr.msk.bf16.mxu0 %vm1551_vm0, %v1550_v1 }
 0x23f   :  { %v635_v36 = vadd.f32 %v1929_v4, %v634_v35  ;;  %v1329_v37 = vpop.f32.mrb[107].mxu1  ;;  %v680_v38 = vmax.f32 %v632_v33, 0.0 }
 0x241   :  { %v681_v39 = vmax.f32 %v635_v36, 0.0 }
 0x243   :  { %v701_v40 = vpack.c.bf16 %v681_v39, %v680_v38 }
 0x244   :  { %v639_v41 = vpop.f32.mrb[108].mxu1 }
 0x245   :  { %v640_v42 = vadd.f32 %v1929_v4, %v639_v41  ;;  %v1332_v43 = vpop.f32.mrb[109].mxu1  ;;  %1419 = vmatmul.mubr.bf16.gmra.mrb[108].mxu0 %v701_v40 }
 0x246   :  { %v642_v44 = vpop.f32.mrb[110].mxu1  ;;  %1422 = vmatprep.mubr.msk.bf16.mxu0 %vm1551_vm0, %v1550_v1 }
 0x247   :  { %v643_v45 = vadd.f32 %v1929_v4, %v642_v44  ;;  %v1333_v46 = vpop.f32.mrb[111].mxu1  ;;  %v682_v47 = vmax.f32 %v640_v42, 0.0 }
 0x249   :  { %v683_v50 = vmax.f32 %v643_v45, 0.0 }
 0x24b   :  { %v702_v51 = vpack.c.bf16 %v683_v50, %v682_v47 }
 0x24d   :  { %1423 = vmatmul.mubr.bf16.gmra.mrb[112].mxu0 %v702_v51 }
 0x290   :  { %v808_v53 = vpop.f32.mrb[40].mxu0 }
 0x291   :  { %v809_v54 = vadd.f32 %v2008_v52, %v808_v53  ;;  %v1352_v55 = vpop.f32.mrb[41].mxu0 }
 0x292   :  { %v811_v56 = vpop.f32.mrb[42].mxu0 }
 0x293   :  { %1450 = vtanh.f32 %v809_v54  ;;  %v812_v1 = vadd.f32 %v2008_v52, %v811_v56  ;;  %v1353_v57 = vpop.f32.mrb[43].mxu0 }
 0x295   :  { %1452 = vtanh.f32 %v812_v1 }
 0x298   :  { %v816_v4 = vpop.f32.mrb[44].mxu0 }
 0x299   :  { %v817_v58 = vadd.f32 %v2008_v52, %v816_v4  ;;  %v1356_v59 = vpop.f32.mrb[45].mxu0 }
 0x29a   :  { %v819_v60 = vpop.f32.mrb[46].mxu0 }
 0x29b   :  { %1454 = vtanh.f32 %v817_v58  ;;  %v820_v61 = vadd.f32 %v2008_v52, %v819_v60  ;;  %v1357_v62 = vpop.f32.mrb[47].mxu0 }
 0x29d   :  { %v1451_v63 = vpop.eup %1450  ;;  %1456 = vtanh.f32 %v820_v61 }
 0x29e   :  { %997 = vst [vmem:[#allocation2] sm:$0xff] %v1451_v63 }
 0x29f   :  { %v1453_v0 = vpop.eup %1452 }
 0x2a0   :  { %998 = vst [vmem:[#allocation2 + $0x8] sm:$0xff] %v1453_v0  ;;  %v824_v2 = vpop.f32.mrb[48].mxu0 }
 0x2a1   :  { %v825_v3 = vadd.f32 %v2008_v52, %v824_v2  ;;  %v1360_v30 = vpop.f32.mrb[49].mxu0 }
 0x2a2   :  { %v827_v49 = vpop.f32.mrb[50].mxu0 }
 0x2a3   :  { %1458 = vtanh.f32 %v825_v3  ;;  %v828_v7 = vadd.f32 %v2008_v52, %v827_v49  ;;  %v1361_v27 = vpop.f32.mrb[51].mxu0 }
 0x2a5   :  { %v1455_v48 = vpop.eup %1454  ;;  %1460 = vtanh.f32 %v828_v7 }
 0x2a6   :  { %999 = vst [vmem:[#allocation2 + $0x10] sm:$0xff] %v1455_v48 }
 0x2a7   :  { %v1457_v5 = vpop.eup %1456 }
 0x2a8   :  { %1000 = vst [vmem:[#allocation2 + $0x18] sm:$0xff] %v1457_v5  ;;  %v832_v6 = vpop.f32.mrb[52].mxu0 }
 0x2a9   :  { %v833_v8 = vadd.f32 %v2008_v52, %v832_v6  ;;  %v1364_v9 = vpop.f32.mrb[53].mxu0 }
 0x2aa   :  { %v835_v10 = vpop.f32.mrb[54].mxu0 }
 0x2ab   :  { %1462 = vtanh.f32 %v833_v8  ;;  %v836_v11 = vadd.f32 %v2008_v52, %v835_v10  ;;  %v1365_v12 = vpop.f32.mrb[55].mxu0 }
 0x2ad   :  { %v1459_v13 = vpop.eup %1458  ;;  %1464 = vtanh.f32 %v836_v11 }
 0x2ae   :  { %1001 = vst [vmem:[#allocation2 + $0x20] sm:$0xff] %v1459_v13 }
 0x2af   :  { %v1461_v14 = vpop.eup %1460 }
 0x2b0   :  { %1002 = vst [vmem:[#allocation2 + $0x28] sm:$0xff] %v1461_v14  ;;  %v840_v15 = vpop.f32.mrb[56].mxu0 }
 0x2b1   :  { %v841_v16 = vadd.f32 %v2008_v52, %v840_v15  ;;  %v1368_v17 = vpop.f32.mrb[57].mxu0 }
 0x2b2   :  { %v843_v18 = vpop.f32.mrb[58].mxu0 }
 0x2b3   :  { %1466 = vtanh.f32 %v841_v16  ;;  %v844_v19 = vadd.f32 %v2008_v52, %v843_v18  ;;  %v1369_v20 = vpop.f32.mrb[59].mxu0 }
 0x2b5   :  { %v1463_v21 = vpop.eup %1462  ;;  %1468 = vtanh.f32 %v844_v19 }
 0x2b6   :  { %1003 = vst [vmem:[#allocation2 + $0x30] sm:$0xff] %v1463_v21 }
 0x2b7   :  { %v1465_v22 = vpop.eup %1464 }
 0x2b8   :  { %1004 = vst [vmem:[#allocation2 + $0x38] sm:$0xff] %v1465_v22  ;;  %v848_v23 = vpop.f32.mrb[60].mxu0 }
 0x2b9   :  { %v849_v24 = vadd.f32 %v2008_v52, %v848_v23  ;;  %v1372_v25 = vpop.f32.mrb[61].mxu0 }
 0x2ba   :  { %v851_v26 = vpop.f32.mrb[62].mxu0 }
 0x2bb   :  { %1470 = vtanh.f32 %v849_v24  ;;  %v852_v28 = vadd.f32 %v2008_v52, %v851_v26  ;;  %v1373_v29 = vpop.f32.mrb[63].mxu0 }
 0x2bd   :  { %v1467_v31 = vpop.eup %1466  ;;  %1472 = vtanh.f32 %v852_v28 }
 0x2be   :  { %1005 = vst [vmem:[#allocation2 + $0x40] sm:$0xff] %v1467_v31 }
 0x2bf   :  { %v1469_v32 = vpop.eup %1468 }
 0x2c0   :  { %1006 = vst [vmem:[#allocation2 + $0x48] sm:$0xff] %v1469_v32  ;;  %v856_v33 = vpop.f32.mrb[64].mxu0 }
 0x2c1   :  { %v857_v34 = vadd.f32 %v2008_v52, %v856_v33  ;;  %v1376_v35 = vpop.f32.mrb[65].mxu0 }
 0x2c2   :  { %v859_v36 = vpop.f32.mrb[66].mxu0 }
 0x2c3   :  { %1474 = vtanh.f32 %v857_v34  ;;  %v860_v37 = vadd.f32 %v2008_v52, %v859_v36  ;;  %v1377_v38 = vpop.f32.mrb[67].mxu0 }
 0x2c5   :  { %v1471_v39 = vpop.eup %1470  ;;  %1476 = vtanh.f32 %v860_v37 }
 0x2c6   :  { %1007 = vst [vmem:[#allocation2 + $0x50] sm:$0xff] %v1471_v39 }
 0x2c7   :  { %v1473_v40 = vpop.eup %1472 }
 0x2c8   :  { %1008 = vst [vmem:[#allocation2 + $0x58] sm:$0xff] %v1473_v40  ;;  %v864_v41 = vpop.f32.mrb[68].mxu0 }
 0x2c9   :  { %v865_v42 = vadd.f32 %v2008_v52, %v864_v41  ;;  %v1380_v43 = vpop.f32.mrb[69].mxu0 }
 0x2ca   :  { %v867_v44 = vpop.f32.mrb[70].mxu0 }
 0x2cb   :  { %1478 = vtanh.f32 %v865_v42  ;;  %v868_v45 = vadd.f32 %v2008_v52, %v867_v44  ;;  %v1381_v46 = vpop.f32.mrb[71].mxu0 }
 0x2cd   :  { %v1475_v47 = vpop.eup %1474  ;;  %1480 = vtanh.f32 %v868_v45 }
 0x2ce   :  { %1009 = vst [vmem:[#allocation2 + $0x60] sm:$0xff] %v1475_v47 }
 0x2cf   :  { %v1477_v50 = vpop.eup %1476 }
 0x2d0   :  { %1010 = vst [vmem:[#allocation2 + $0x68] sm:$0xff] %v1477_v50  ;;  %v872_v51 = vpop.f32.mrb[72].mxu0 }
 0x2d1   :  { %v873_v53 = vadd.f32 %v2008_v52, %v872_v51  ;;  %v1384_v54 = vpop.f32.mrb[73].mxu0 }
 0x2d2   :  { %v875_v55 = vpop.f32.mrb[74].mxu0 }
 0x2d3   :  { %1482 = vtanh.f32 %v873_v53  ;;  %v876_v56 = vadd.f32 %v2008_v52, %v875_v55  ;;  %v1385_v1 = vpop.f32.mrb[75].mxu0 }
 0x2d5   :  { %v1479_v57 = vpop.eup %1478  ;;  %1484 = vtanh.f32 %v876_v56 }
 0x2d6   :  { %1011 = vst [vmem:[#allocation2 + $0x70] sm:$0xff] %v1479_v57 }
 0x2d7   :  { %v1481_v4 = vpop.eup %1480 }
 0x2d8   :  { %1012 = vst [vmem:[#allocation2 + $0x78] sm:$0xff] %v1481_v4  ;;  %v880_v58 = vpop.f32.mrb[76].mxu0 }
 0x2d9   :  { %v881_v59 = vadd.f32 %v2008_v52, %v880_v58  ;;  %v1388_v60 = vpop.f32.mrb[77].mxu0 }
 0x2da   :  { %v883_v61 = vpop.f32.mrb[78].mxu0 }
 0x2db   :  { %1486 = vtanh.f32 %v881_v59  ;;  %v884_v62 = vadd.f32 %v2008_v52, %v883_v61  ;;  %v1389_v63 = vpop.f32.mrb[79].mxu0 }
 0x2dd   :  { %v1483_v0 = vpop.eup %1482  ;;  %1488 = vtanh.f32 %v884_v62 }
 0x2de   :  { %1013 = vst [vmem:[#allocation2 + $0x80] sm:$0xff] %v1483_v0 }
 0x2df   :  { %v1485_v2 = vpop.eup %1484 }
 0x2e0   :  { %1014 = vst [vmem:[#allocation2 + $0x88] sm:$0xff] %v1485_v2  ;;  %v888_v3 = vpop.f32.mrb[80].mxu0 }
 0x2e1   :  { %v889_v30 = vadd.f32 %v2008_v52, %v888_v3  ;;  %v1392_v49 = vpop.f32.mrb[81].mxu0 }
 0x2e2   :  { %v891_v7 = vpop.f32.mrb[82].mxu0 }
 0x2e3   :  { %1490 = vtanh.f32 %v889_v30  ;;  %v892_v27 = vadd.f32 %v2008_v52, %v891_v7  ;;  %v1393_v48 = vpop.f32.mrb[83].mxu0 }
 0x2e5   :  { %v1487_v5 = vpop.eup %1486  ;;  %1492 = vtanh.f32 %v892_v27 }
 0x2e6   :  { %1015 = vst [vmem:[#allocation2 + $0x90] sm:$0xff] %v1487_v5 }
 0x2e7   :  { %v1489_v6 = vpop.eup %1488 }
 0x2e8   :  { %1016 = vst [vmem:[#allocation2 + $0x98] sm:$0xff] %v1489_v6  ;;  %v896_v8 = vpop.f32.mrb[84].mxu0 }
 0x2e9   :  { %v897_v9 = vadd.f32 %v2008_v52, %v896_v8  ;;  %v1396_v10 = vpop.f32.mrb[85].mxu0 }
 0x2ea   :  { %v899_v11 = vpop.f32.mrb[86].mxu0 }
 0x2eb   :  { %1494 = vtanh.f32 %v897_v9  ;;  %v900_v12 = vadd.f32 %v2008_v52, %v899_v11  ;;  %v1397_v13 = vpop.f32.mrb[87].mxu0 }
 0x2ed   :  { %v1491_v14 = vpop.eup %1490  ;;  %1496 = vtanh.f32 %v900_v12 }
 0x2ee   :  { %1017 = vst [vmem:[#allocation2 + $0xa0] sm:$0xff] %v1491_v14 }
 0x2ef   :  { %v1493_v15 = vpop.eup %1492 }
 0x2f0   :  { %1018 = vst [vmem:[#allocation2 + $0xa8] sm:$0xff] %v1493_v15  ;;  %v904_v16 = vpop.f32.mrb[88].mxu0 }
 0x2f1   :  { %v905_v17 = vadd.f32 %v2008_v52, %v904_v16  ;;  %v1400_v18 = vpop.f32.mrb[89].mxu0 }
 0x2f2   :  { %v907_v19 = vpop.f32.mrb[90].mxu0 }
 0x2f3   :  { %1498 = vtanh.f32 %v905_v17  ;;  %v908_v20 = vadd.f32 %v2008_v52, %v907_v19  ;;  %v1401_v21 = vpop.f32.mrb[91].mxu0 }
 0x2f5   :  { %v1495_v22 = vpop.eup %1494  ;;  %1500 = vtanh.f32 %v908_v20 }
 0x2f6   :  { %1019 = vst [vmem:[#allocation2 + $0xb0] sm:$0xff] %v1495_v22 }
 0x2f7   :  { %v1497_v23 = vpop.eup %1496 }
 0x2f8   :  { %1020 = vst [vmem:[#allocation2 + $0xb8] sm:$0xff] %v1497_v23  ;;  %v912_v24 = vpop.f32.mrb[92].mxu0 }
 0x2f9   :  { %v913_v25 = vadd.f32 %v2008_v52, %v912_v24  ;;  %v1404_v26 = vpop.f32.mrb[93].mxu0 }
 0x2fa   :  { %v915_v28 = vpop.f32.mrb[94].mxu0 }
 0x2fb   :  { %1502 = vtanh.f32 %v913_v25  ;;  %v916_v29 = vadd.f32 %v2008_v52, %v915_v28  ;;  %v1405_v31 = vpop.f32.mrb[95].mxu0 }
 0x2fd   :  { %v1499_v32 = vpop.eup %1498  ;;  %1504 = vtanh.f32 %v916_v29 }
 0x2fe   :  { %1021 = vst [vmem:[#allocation2 + $0xc0] sm:$0xff] %v1499_v32 }
 0x2ff   :  { %v1501_v33 = vpop.eup %1500 }
 0x300   :  { %1022 = vst [vmem:[#allocation2 + $0xc8] sm:$0xff] %v1501_v33  ;;  %v920_v34 = vpop.f32.mrb[96].mxu0 }
 0x301   :  { %v921_v35 = vadd.f32 %v2008_v52, %v920_v34  ;;  %v1408_v36 = vpop.f32.mrb[97].mxu0 }
 0x302   :  { %v923_v37 = vpop.f32.mrb[98].mxu0 }
 0x303   :  { %1506 = vtanh.f32 %v921_v35  ;;  %v924_v38 = vadd.f32 %v2008_v52, %v923_v37  ;;  %v1409_v39 = vpop.f32.mrb[99].mxu0 }
 0x305   :  { %v1503_v40 = vpop.eup %1502  ;;  %1508 = vtanh.f32 %v924_v38 }
 0x306   :  { %1023 = vst [vmem:[#allocation2 + $0xd0] sm:$0xff] %v1503_v40 }
 0x307   :  { %v1505_v41 = vpop.eup %1504 }
 0x308   :  { %1024 = vst [vmem:[#allocation2 + $0xd8] sm:$0xff] %v1505_v41  ;;  %v928_v42 = vpop.f32.mrb[100].mxu0 }
 0x309   :  { %v929_v43 = vadd.f32 %v2008_v52, %v928_v42  ;;  %v1412_v44 = vpop.f32.mrb[101].mxu0 }
 0x30a   :  { %v931_v45 = vpop.f32.mrb[102].mxu0 }
 0x30b   :  { %1510 = vtanh.f32 %v929_v43  ;;  %v932_v46 = vadd.f32 %v2008_v52, %v931_v45  ;;  %v1413_v47 = vpop.f32.mrb[103].mxu0 }
 0x30d   :  { %v1507_v50 = vpop.eup %1506  ;;  %1512 = vtanh.f32 %v932_v46 }
 0x30e   :  { %1025 = vst [vmem:[#allocation2 + $0xe0] sm:$0xff] %v1507_v50 }
 0x30f   :  { %v1509_v51 = vpop.eup %1508 }
 0x310   :  { %1026 = vst [vmem:[#allocation2 + $0xe8] sm:$0xff] %v1509_v51  ;;  %v936_v53 = vpop.f32.mrb[104].mxu0 }
 0x311   :  { %v937_v54 = vadd.f32 %v2008_v52, %v936_v53  ;;  %v1416_v55 = vpop.f32.mrb[105].mxu0 }
 0x312   :  { %v939_v56 = vpop.f32.mrb[106].mxu0 }
 0x313   :  { %1514 = vtanh.f32 %v937_v54  ;;  %v940_v1 = vadd.f32 %v2008_v52, %v939_v56  ;;  %v1417_v57 = vpop.f32.mrb[107].mxu0 }
 0x315   :  { %v1511_v4 = vpop.eup %1510  ;;  %1516 = vtanh.f32 %v940_v1 }
 0x316   :  { %1027 = vst [vmem:[#allocation2 + $0xf0] sm:$0xff] %v1511_v4 }
 0x317   :  { %v1513_v58 = vpop.eup %1512 }
 0x318   :  { %1028 = vst [vmem:[#allocation2 + $0xf8] sm:$0xff] %v1513_v58  ;;  %v944_v59 = vpop.f32.mrb[108].mxu0 }
 0x319   :  { %v945_v60 = vadd.f32 %v2008_v52, %v944_v59  ;;  %v1420_v61 = vpop.f32.mrb[109].mxu0 }
 0x31a   :  { %v947_v62 = vpop.f32.mrb[110].mxu0 }
 0x31b   :  { %1518 = vtanh.f32 %v945_v60  ;;  %v948_v63 = vadd.f32 %v2008_v52, %v947_v62  ;;  %v1421_v0 = vpop.f32.mrb[111].mxu0 }
 0x31d   :  { %v1515_v2 = vpop.eup %1514  ;;  %1520 = vtanh.f32 %v948_v63 }
 0x31e   :  { %1029 = vst [vmem:[#allocation2 + $0x100] sm:$0xff] %v1515_v2 }
 0x31f   :  { %v1517_v3 = vpop.eup %1516 }
 0x320   :  { %1030 = vst [vmem:[#allocation2 + $0x108] sm:$0xff] %v1517_v3  ;;  %v952_v30 = vpop.f32.mrb[112].mxu0 }
 0x321   :  { %v953_v49 = vadd.f32 %v2008_v52, %v952_v30  ;;  %v1424_v7 = vpop.f32.mrb[113].mxu0 }
 0x322   :  { %v955_v27 = vpop.f32.mrb[114].mxu0 }
 0x323   :  { %1522 = vtanh.f32 %v953_v49  ;;  %v956_v48 = vadd.f32 %v2008_v52, %v955_v27  ;;  %v1425_v5 = vpop.f32.mrb[115].mxu0 }
 0x325   :  { %v1519_v6 = vpop.eup %1518  ;;  %1524 = vtanh.f32 %v956_v48 }
 0x326   :  { %1031 = vst [vmem:[#allocation2 + $0x110] sm:$0xff] %v1519_v6 }
 0x327   :  { %v1521_v8 = vpop.eup %1520 }
 0x328   :  { %1032 = vst [vmem:[#allocation2 + $0x118] sm:$0xff] %v1521_v8 }
 0x32d   :  { %v1523_v9 = vpop.eup %1522 }
 0x32e   :  { %1033 = vst [vmem:[#allocation2 + $0x120] sm:$0xff] %v1523_v9 }
 0x32f   :  { %v1525_v10 = vpop.eup %1524 }
 0x330   :  { %1034 = vst [vmem:[#allocation2 + $0x128] sm:$0xff] %v1525_v10 }
 0x331   :  { %1537 = shalt.err (!%p1534_p4)
}
 0x332   :  { %s1538_s9 = scalar_lea.hbm %s2065_s5, 4864 }
 0x333   :  { %p1539_p5 = scmp.ne.s32.totalorder %s2065_s5, %s1538_s9  ;;  %p1542_p6 = scmp.lt.u32.totalorder %s1538_s9, %s2065_s5 }
 0x335   :  { %p1544_p7 = pnand %p1542_p6, %p1539_p5 }
 0x337   :  { %1547 = shalt.err (!%p1544_p7)
}
 0x338   :  { %s1553_s0 = smov 128   ;;  %s1554_s1 = smov 8  }
 0x339   :  { %1046 = dma.vmem_to_hbm [thread:$0]  %s1041_s30, 4864, %s2065_s5, [#allocation3], %s1553_s0, %s1553_s0, %s1554_s1  }
 0x33a   :  { %1548 = dma.done.wait [#allocation3], 4864  }
 0x33b   :  { %1549 = vsyncadd [#allocation3], 4294962432 }
 0x33c   :  { %1050 = vsyncpa [#allocation3], 1 }

</bundles_post_ra>
